<compile_context>
chip_gen: v5e
topology: v5e:2x2
jax: 0.10.0
libtpu: 0.0.40
codegen_flags: <defaults>
</compile_context>

<pallas_src>
import math
import functools

import jax
import jax.numpy as jnp
from jax.experimental import pallas as pl
from jax.experimental.pallas import tpu as pltpu

LN_EPS = 1e-5          # torch.nn.LayerNorm default
NEG_INF = -1e30        # finite "-inf": no NaN when a query row is fully masked


# ----------------------------------------------------------------------------
# in-kernel helpers (traced inside the Pallas kernel, all f32)
# ----------------------------------------------------------------------------
def _layer_norm(x, w, b):
    mu = jnp.mean(x, axis=-1, keepdims=True)
    var = jnp.mean(jnp.square(x - mu), axis=-1, keepdims=True)
    return (x - mu) * jax.lax.rsqrt(var + LN_EPS) * w + b


def _gelu(x):
    # TODO(synk): F.gelu default is the exact erf-based GELU; we use the tanh
    # approximation (lax.erf lowering in Mosaic is version-dependent),
    # expect ~1e-3 divergence from the PyTorch reference.
    c = math.sqrt(2.0 / math.pi)
    return 0.5 * x * (1.0 + jnp.tanh(c * (x + 0.044715 * x * x * x)))


# ----------------------------------------------------------------------------
# fused kernel: grid = (batch_tiles, layers), residual x resident in VMEM scratch
# ----------------------------------------------------------------------------
def fused_transformer_kernel(
    x0_ref, pad_ref, wattn_ref, w1_ref, w2_ref, vecs_ref, b1_ref,
    outw_ref, outb_ref,
    o_ref, x_scr,
    *, num_heads, seq, b_tile,
):
    layer = pl.program_id(1)
    rows = b_tile * seq
    D = x_scr.shape[1]
    hd = D // num_heads
    inv_sqrt_hd = 1.0 / math.sqrt(hd)

    # ---- layer 0 only: load the (emb*sqrt(D) + posenc) rows for this tile ----
    @pl.when(layer == 0)
    def _():
        x_scr[...] = x0_ref[...]

    x = x_scr[...]                                   # (rows, D) f32 residual

    # packed per-layer vectors: [ln1w, ln1b, bq, bk, bv, bo, ln2w, ln2b, b2]
    vecs = vecs_ref[0]                               # (9, D) f32
    ln1w, ln1b = vecs[0:1], vecs[1:2]
    bq, bk, bv, bo = vecs[2:3], vecs[3:4], vecs[4:5], vecs[5:6]
    ln2w, ln2b, b2 = vecs[6:7], vecs[7:8], vecs[8:9]

    # ---- self-attention block (norm_first) -----------------------------------
    xn = _layer_norm(x, ln1w, ln1b).astype(jnp.bfloat16)
    # three full-width matmuls (bf16 operands, f32 accumulation)
    q = jnp.dot(xn, wattn_ref[0, 0], preferred_element_type=jnp.float32) + bq
    k = jnp.dot(xn, wattn_ref[0, 1], preferred_element_type=jnp.float32) + bk
    v = jnp.dot(xn, wattn_ref[0, 2], preferred_element_type=jnp.float32) + bv

    # head split: (rows, D) -> (H*b_tile, S, hd), batch ordering (head, batch)
    def to_heads(t):
        return jnp.concatenate(
            [t[:, h * hd:(h + 1) * hd].reshape(b_tile, seq, hd)
             for h in range(num_heads)], axis=0)

    q3 = to_heads(q).astype(jnp.bfloat16)
    k3 = to_heads(k).astype(jnp.bfloat16)
    v3 = to_heads(v).astype(jnp.bfloat16)

    # additive mask built in-kernel: causal (iota) + key padding, finite -1e30
    r_idx = jax.lax.broadcasted_iota(jnp.int32, (seq, seq), 0)
    c_idx = jax.lax.broadcasted_iota(jnp.int32, (seq, seq), 1)
    causal = jnp.where(c_idx > r_idx, NEG_INF, 0.0).astype(jnp.float32)
    mask = causal[None, :, :] + pad_ref[...]         # (b_tile, S, S)

    # ONE batched score einsum over all heads, mask added once (broadcast over H)
    s = jnp.einsum("bqd,bkd->bqk", q3, k3,
                   preferred_element_type=jnp.float32) * inv_sqrt_hd
    s = (s.reshape(num_heads, b_tile, seq, seq) + mask[None]
         ).reshape(num_heads * b_tile, seq, seq)
    m = jnp.max(s, axis=-1, keepdims=True)
    e = jnp.exp(s - m)
    p = e * pl.reciprocal(jnp.sum(e, axis=-1, keepdims=True), approx=False)

    # ONE batched value einsum over all heads
    o3 = jnp.einsum("bqk,bkd->bqd", p.astype(jnp.bfloat16), v3,
                    preferred_element_type=jnp.float32)        # (H*b_tile, S, hd)

    # rejoin heads into (rows, D) and do ONE output-projection matmul
    attn_rows = jnp.concatenate(
        [o3[h * b_tile:(h + 1) * b_tile].reshape(rows, hd)
         for h in range(num_heads)], axis=1).astype(jnp.bfloat16)
    attn = jnp.dot(attn_rows, wattn_ref[0, 3],
                   preferred_element_type=jnp.float32) + bo
    x1 = x + attn                                    # dropout = identity (eval)

    # ---- feed-forward block (norm_first) --------------------------------------
    xn2 = _layer_norm(x1, ln2w, ln2b).astype(jnp.bfloat16)
    h1 = _gelu(jnp.dot(xn2, w1_ref[0], preferred_element_type=jnp.float32)
               + b1_ref[0])
    ff = jnp.dot(h1.astype(jnp.bfloat16), w2_ref[0],
                 preferred_element_type=jnp.float32) + b2
    xout = x1 + ff
    x_scr[...] = xout

    # ---- last layer only: output projection + log_softmax (lane-dense Vp) ----
    @pl.when(layer == pl.num_programs(1) - 1)
    def _():
        logits = jnp.dot(xout.astype(jnp.bfloat16), outw_ref[...],
                         preferred_element_type=jnp.float32) + outb_ref[...]
        mm = jnp.max(logits, axis=-1, keepdims=True)
        z = logits - mm
        o_ref[...] = z - jnp.log(jnp.sum(jnp.exp(z), axis=-1, keepdims=True))


def run_transformer(x0, pad, p, *, num_heads, batch, seq, b_tile=1):
    nrows, D = x0.shape
    L = p["w_attn"].shape[0]
    d_hid = p["w1_t"].shape[2]
    Vp = p["out_w_t"].shape[1]
    assert batch % b_tile == 0
    rows_t = b_tile * seq

    in_specs = [
        pl.BlockSpec((rows_t, D), lambda b, l: (b, 0)),           # emb*scale + pos
        pl.BlockSpec((b_tile, 1, seq), lambda b, l: (b, 0, 0)),   # pad indicator
        pl.BlockSpec((1, 4, D, D), lambda b, l: (l, 0, 0, 0)),    # Wq/Wk/Wv/Wo (bf16)
        pl.BlockSpec((1, D, d_hid), lambda b, l: (l, 0, 0)),      # linear1 (bf16)
        pl.BlockSpec((1, d_hid, D), lambda b, l: (l, 0, 0)),      # linear2 (bf16)
        pl.BlockSpec((1, 9, D), lambda b, l: (l, 0, 0)),          # packed vectors
        pl.BlockSpec((1, 1, d_hid), lambda b, l: (l, 0, 0)),      # linear1 bias
        pl.BlockSpec((D, Vp), lambda b, l: (0, 0)),               # out head (bf16)
        pl.BlockSpec((1, Vp), lambda b, l: (0, 0)),               # out bias (padded)
    ]

    return pl.pallas_call(
        functools.partial(fused_transformer_kernel, num_heads=num_heads,
                          seq=seq, b_tile=b_tile),
        out_shape=jax.ShapeDtypeStruct((nrows, Vp), jnp.float32),
        grid=(batch // b_tile, L),
        in_specs=in_specs,
        out_specs=pl.BlockSpec((rows_t, Vp), lambda b, l: (b, 0)),
        scratch_shapes=[pltpu.VMEM((rows_t, D), jnp.float32)],    # resident residual
        compiler_params=pltpu.CompilerParams(
            # batch tiles shard across cores (v7x); layer axis carries x_scr
            dimension_semantics=("parallel", "arbitrary")),
    )(
        x0, pad, p["w_attn"], p["w1_t"], p["w2_t"], p["vecs"], p["b1"],
        p["out_w_t"], p["out_b"],
    )


# ----------------------------------------------------------------------------
# parameter construction (deterministic, shapes match the torch module; weights
# pre-transposed to (in, out), packed per layer, matmul weights pre-cast bf16)
# ----------------------------------------------------------------------------
def xavier_uniform(key, shape):
    fan_out, fan_in = shape                 # torch Linear/Embedding weight is (out, in)
    bound = math.sqrt(6.0 / (fan_in + fan_out))
    return jax.random.uniform(key, shape, jnp.float32, -bound, bound)


def make_pos_encoding(max_len, dim_model):
    pos = jnp.arange(max_len, dtype=jnp.float32)[:, None]
    div = jnp.exp(jnp.arange(0, dim_model, 2, dtype=jnp.float32)
                  * (-math.log(10000.0) / dim_model))
    pe = jnp.zeros((max_len, dim_model), jnp.float32)
    pe = pe.at[:, 0::2].set(jnp.sin(pos * div))
    pe = pe.at[:, 1::2].set(jnp.cos(pos * div))
    return pe[:, None, :]                   # (max_len, 1, D)


def init_params(key, num_tokens, dim_model, d_hid, num_layers, pad_idx, v_padded):
    D = dim_model
    keys = jax.random.split(key, 2 + 4 * num_layers)
    emb = xavier_uniform(keys[0], (num_tokens, D)).at[pad_idx].set(0.0)

    w_attn, vecs, w1_t, w2_t, b1 = [], [], [], [], []
    ones_d = jnp.ones((D,), jnp.float32)
    zeros_d = jnp.zeros((D,), jnp.float32)
    for l in range(num_layers):
        k0, k1, k2, k3 = keys[2 + 4 * l: 6 + 4 * l]
        w_in = xavier_uniform(k0, (3 * D, D))                 # torch in_proj_weight
        wq_t, wk_t, wv_t = w_in[:D].T, w_in[D:2 * D].T, w_in[2 * D:].T
        wo_t = xavier_uniform(k1, (D, D)).T
        w_attn.append(jnp.stack([wq_t, wk_t, wv_t, wo_t], axis=0))   # (4, D, D)
        # packed per-layer vectors: [ln1w, ln1b, bq, bk, bv, bo, ln2w, ln2b, b2]
        vecs.append(jnp.stack([ones_d, zeros_d, zeros_d, zeros_d, zeros_d,
                               zeros_d, ones_d, zeros_d, zeros_d], axis=0))
        w1_t.append(xavier_uniform(k2, (d_hid, D)).T)          # (D, d_hid)
        w2_t.append(xavier_uniform(k3, (D, d_hid)).T)          # (d_hid, D)
        b1.append(jnp.zeros((1, d_hid), jnp.float32))

    # output head: pre-transpose to (D, V), pad V to a 128-lane multiple; padded
    # columns get weight 0 and bias -1e30 so they vanish from the log-sum-exp.
    out_w = xavier_uniform(keys[1], (num_tokens, D))           # (V, D)
    out_w_t = jnp.zeros((D, v_padded), jnp.float32).at[:, :num_tokens].set(out_w.T)
    out_b = jnp.full((1, v_padded), NEG_INF, jnp.float32).at[:, :num_tokens].set(0.0)

    bf16 = jnp.bfloat16
    return dict(
        embedding=emb,
        w_attn=jnp.stack(w_attn, 0).astype(bf16),   # (L, 4, D, D)
        vecs=jnp.stack(vecs, 0),                    # (L, 9, D)  f32
        w1_t=jnp.stack(w1_t, 0).astype(bf16),       # (L, D, d_hid)
        w2_t=jnp.stack(w2_t, 0).astype(bf16),       # (L, d_hid, D)
        b1=jnp.stack(b1, 0),                        # (L, 1, d_hid) f32
        out_w_t=out_w_t.astype(bf16),               # (D, Vp)
        out_b=out_b,                                # (1, Vp) f32
    )


# ----------------------------------------------------------------------------
# full forward: thin JAX glue (gather, pad indicator, layout) + one fused kernel
# ----------------------------------------------------------------------------
def transformer_forward(params, pos_enc, src, num_heads, pad_idx):
    S, B = src.shape
    V, D = params["embedding"].shape

    # embedding gather is glue (lookup); scale + posenc are pre-combined so the
    # kernel gets a single (B*S, D) input (one DMA, no layer-0-only constants).
    emb = params["embedding"][src]                               # (S, B, D)
    x = emb * math.sqrt(D) + pos_enc[:S]                         # posenc broadcast
    x0 = jnp.transpose(x, (1, 0, 2)).reshape(B * S, D)           # rows = b*S + s

    # key-padding indicator only; the causal part is rebuilt in-kernel from iota
    pad = jnp.where(jnp.transpose(src) == pad_idx, NEG_INF, 0.0).astype(jnp.float32)
    pad = pad[:, None, :]                                        # (B, 1, S)

    out = run_transformer(x0, pad, params, num_heads=num_heads,
                          batch=B, seq=S)                        # (B*S, Vp)
    out = out.reshape(B, S, -1)[:, :, :V]                        # strip lane padding
    return jnp.transpose(out, (1, 0, 2))                         # (S, B, V) like PyTorch


# ----------------------------------------------------------------------------
if __name__ == "__main__":
    # small config consistent with the module's __init__
    num_tokens = 64
    dim_model = 32
    num_heads = 4
    d_hid = 64
    num_layers = 2
    n_positions = 16
    pad_idx = 0
    S, B = 8, 2
    v_padded = max(128, ((num_tokens + 127) // 128) * 128)   # lane-dense output

    key = jax.random.PRNGKey(0)
    k_param, k_tok = jax.random.split(key)

    params = init_params(k_param, num_tokens, dim_model, d_hid, num_layers,
                         pad_idx, v_padded)
    pos_enc = make_pos_encoding(n_positions, dim_model)

    # deterministic token ids, (S, B) seq-first like the PyTorch forward;
    # place one pad token at the end of batch 1 to exercise the pad mask.
    src = jax.random.randint(k_tok, (S, B), 1, num_tokens, dtype=jnp.int32)
    src = src.at[S - 1, 1].set(pad_idx)

    out = transformer_forward(params, pos_enc, src, num_heads, pad_idx)
    out = jax.block_until_ready(out)

    assert out.shape == (S, B, num_tokens), out.shape
    assert bool(jnp.all(jnp.isfinite(out)))
    # log_softmax rows sum to 1 in prob space
    assert bool(jnp.allclose(jnp.sum(jnp.exp(out), axis=-1), 1.0, atol=1e-4))
    print("KERNEL_OK")
</pallas_src>

<mosaic_0001>
module attributes {stable_mosaic.version = 11 : i64} {
  func.func @fused_transformer_kernel(%arg0: i32, %arg1: i32, %arg2: memref<8x32xf32, #tpu.memory_space<vmem>>, %arg3: memref<1x1x8xf32, #tpu.memory_space<vmem>>, %arg4: memref<1x4x32x32xbf16, #tpu.memory_space<vmem>>, %arg5: memref<1x32x64xbf16, #tpu.memory_space<vmem>>, %arg6: memref<1x64x32xbf16, #tpu.memory_space<vmem>>, %arg7: memref<1x9x32xf32, #tpu.memory_space<vmem>>, %arg8: memref<1x1x64xf32, #tpu.memory_space<vmem>>, %arg9: memref<32x128xbf16, #tpu.memory_space<vmem>>, %arg10: memref<1x128xf32, #tpu.memory_space<vmem>>, %arg11: memref<8x128xf32, #tpu.memory_space<vmem>>, %arg12: memref<8x32xf32, #tpu.memory_space<vmem>>) attributes {dimension_semantics = [#tpu.dimension_semantics<parallel>, #tpu.dimension_semantics<arbitrary>], iteration_bounds = array<i64: 2, 2>, scalar_prefetch = 0 : i64, scratch_operands = 1 : i64, tpu.core_type = #tpu.core_type<tc>, window_params = [{transform_indices = @transform_0, window_bounds = array<i64: 8, 32>}, {transform_indices = @transform_1, window_bounds = array<i64: 1, 1, 8>}, {transform_indices = @transform_2, window_bounds = array<i64: 1, 4, 32, 32>}, {transform_indices = @transform_3, window_bounds = array<i64: 1, 32, 64>}, {transform_indices = @transform_4, window_bounds = array<i64: 1, 64, 32>}, {transform_indices = @transform_5, window_bounds = array<i64: 1, 9, 32>}, {transform_indices = @transform_6, window_bounds = array<i64: 1, 1, 64>}, {pipeline_mode = #tpu.pipeline_mode<synchronous>, transform_indices = @transform_7, window_bounds = array<i64: 32, 128>}, {pipeline_mode = #tpu.pipeline_mode<synchronous>, transform_indices = @transform_8, window_bounds = array<i64: 1, 128>}, {transform_indices = @transform_9, window_bounds = array<i64: 8, 128>}]} {
    %c0_i32 = arith.constant 0 : i32
    %0 = arith.cmpi eq, %arg1, %c0_i32 : i32
    %1 = arith.extui %0 : i1 to i32
    %c0_i32_0 = arith.constant 0 : i32
    %2 = arith.cmpi ne, %1, %c0_i32_0 : i32
    scf.if %2 {
      %c0_59 = arith.constant 0 : index
      %c0_60 = arith.constant 0 : index
      %183 = vector.load %arg2[%c0_59, %c0_60] : memref<8x32xf32, #tpu.memory_space<vmem>>, vector<8x32xf32>
      %c0_61 = arith.constant 0 : index
      %c0_62 = arith.constant 0 : index
      %184 = vector.load %arg12[%c0_61, %c0_62] : memref<8x32xf32, #tpu.memory_space<vmem>>, vector<8x32xf32>
      tpu.vector_store %arg12[%c0_61, %c0_62], %183 {strides = array<i32>} : memref<8x32xf32, #tpu.memory_space<vmem>>, vector<8x32xf32>,
    } else {
    }
    %c0 = arith.constant 0 : index
    %c0_1 = arith.constant 0 : index
    %3 = vector.load %arg12[%c0, %c0_1] : memref<8x32xf32, #tpu.memory_space<vmem>>, vector<8x32xf32>
    %c0_2 = arith.constant 0 : index
    %c0_3 = arith.constant 0 : index
    %c0_4 = arith.constant 0 : index
    %4 = vector.load %arg7[%c0_2, %c0_3, %c0_4] : memref<1x9x32xf32, #tpu.memory_space<vmem>>, vector<1x9x32xf32>
    %5 = vector.shape_cast %4 : vector<1x9x32xf32> to vector<9x32xf32>
    %6 = vector.extract_strided_slice %5 {offsets = [0, 0], sizes = [1, 32], strides = [1, 1]} : vector<9x32xf32> to vector<1x32xf32>
    %7 = vector.extract_strided_slice %5 {offsets = [1, 0], sizes = [1, 32], strides = [1, 1]} : vector<9x32xf32> to vector<1x32xf32>
    %8 = vector.extract_strided_slice %5 {offsets = [2, 0], sizes = [1, 32], strides = [1, 1]} : vector<9x32xf32> to vector<1x32xf32>
    %9 = vector.extract_strided_slice %5 {offsets = [3, 0], sizes = [1, 32], strides = [1, 1]} : vector<9x32xf32> to vector<1x32xf32>
    %10 = vector.extract_strided_slice %5 {offsets = [4, 0], sizes = [1, 32], strides = [1, 1]} : vector<9x32xf32> to vector<1x32xf32>
    %11 = vector.extract_strided_slice %5 {offsets = [5, 0], sizes = [1, 32], strides = [1, 1]} : vector<9x32xf32> to vector<1x32xf32>
    %12 = vector.extract_strided_slice %5 {offsets = [6, 0], sizes = [1, 32], strides = [1, 1]} : vector<9x32xf32> to vector<1x32xf32>
    %13 = vector.extract_strided_slice %5 {offsets = [7, 0], sizes = [1, 32], strides = [1, 1]} : vector<9x32xf32> to vector<1x32xf32>
    %14 = vector.extract_strided_slice %5 {offsets = [8, 0], sizes = [1, 32], strides = [1, 1]} : vector<9x32xf32> to vector<1x32xf32>
    %cst = arith.constant dense<0.000000e+00> : vector<8xf32>
    %15 = vector.multi_reduction <add>, %3, %cst [1] : vector<8x32xf32> to vector<8xf32>
    %16 = vector.shape_cast %15 : vector<8xf32> to vector<8x1xf32>
    %cst_5 = arith.constant 3.200000e+01 : f32
    %17 = vector.broadcast %cst_5 : f32 to vector<8x1xf32>
    %18 = arith.divf %16, %17 : vector<8x1xf32>
    %19 = vector.broadcast %18 : vector<8x1xf32> to vector<8x32xf32>
    %20 = arith.subf %3, %19 : vector<8x32xf32>
    %21 = arith.mulf %20, %20 : vector<8x32xf32>
    %cst_6 = arith.constant dense<0.000000e+00> : vector<8xf32>
    %22 = vector.multi_reduction <add>, %21, %cst_6 [1] : vector<8x32xf32> to vector<8xf32>
    %23 = vector.shape_cast %22 : vector<8xf32> to vector<8x1xf32>
    %cst_7 = arith.constant 3.200000e+01 : f32
    %24 = vector.broadcast %cst_7 : f32 to vector<8x1xf32>
    %25 = arith.divf %23, %24 : vector<8x1xf32>
    %26 = vector.broadcast %18 : vector<8x1xf32> to vector<8x32xf32>
    %27 = arith.subf %3, %26 : vector<8x32xf32>
    %cst_8 = arith.constant 9.99999974E-6 : f32
    %28 = vector.broadcast %cst_8 : f32 to vector<8x1xf32>
    %29 = arith.addf %25, %28 : vector<8x1xf32>
    %30 = math.rsqrt %29 : vector<8x1xf32>
    %31 = vector.broadcast %30 : vector<8x1xf32> to vector<8x32xf32>
    %32 = arith.mulf %27, %31 : vector<8x32xf32>
    %33 = vector.broadcast %6 : vector<1x32xf32> to vector<8x32xf32>
    %34 = arith.mulf %32, %33 : vector<8x32xf32>
    %35 = vector.broadcast %7 : vector<1x32xf32> to vector<8x32xf32>
    %36 = arith.addf %34, %35 : vector<8x32xf32>
    %37 = arith.truncf %36 : vector<8x32xf32> to vector<8x32xbf16>
    %c0_9 = arith.constant 0 : index
    %c0_10 = arith.constant 0 : index
    %c0_11 = arith.constant 0 : index
    %c0_12 = arith.constant 0 : index
    %38 = vector.load %arg4[%c0_9, %c0_10, %c0_11, %c0_12] : memref<1x4x32x32xbf16, #tpu.memory_space<vmem>>, vector<1x1x32x32xbf16>
    %39 = vector.shape_cast %38 : vector<1x1x32x32xbf16> to vector<32x32xbf16>
    %cst_13 = arith.constant dense<0.000000e+00> : vector<8x32xf32>
    %40 = tpu.matmul %37, %39, %cst_13 {dimension_numbers = #tpu.dot_dimension_numbers<[1], [0], [0], [1], [0, 0, 1, 1], [], []>} : vector<8x32xbf16>, vector<32x32xbf16>, vector<8x32xf32> -> vector<8x32xf32>
    %41 = vector.broadcast %8 : vector<1x32xf32> to vector<8x32xf32>
    %42 = arith.addf %40, %41 : vector<8x32xf32>
    %c0_14 = arith.constant 0 : index
    %c1 = arith.constant 1 : index
    %c0_15 = arith.constant 0 : index
    %c0_16 = arith.constant 0 : index
    %43 = vector.load %arg4[%c0_14, %c1, %c0_15, %c0_16] : memref<1x4x32x32xbf16, #tpu.memory_space<vmem>>, vector<1x1x32x32xbf16>
    %44 = vector.shape_cast %43 : vector<1x1x32x32xbf16> to vector<32x32xbf16>
    %cst_17 = arith.constant dense<0.000000e+00> : vector<8x32xf32>
    %45 = tpu.matmul %37, %44, %cst_17 {dimension_numbers = #tpu.dot_dimension_numbers<[1], [0], [0], [1], [0, 0, 1, 1], [], []>} : vector<8x32xbf16>, vector<32x32xbf16>, vector<8x32xf32> -> vector<8x32xf32>
    %46 = vector.broadcast %9 : vector<1x32xf32> to vector<8x32xf32>
    %47 = arith.addf %45, %46 : vector<8x32xf32>
    %c0_18 = arith.constant 0 : index
    %c2 = arith.constant 2 : index
    %c0_19 = arith.constant 0 : index
    %c0_20 = arith.constant 0 : index
    %48 = vector.load %arg4[%c0_18, %c2, %c0_19, %c0_20] : memref<1x4x32x32xbf16, #tpu.memory_space<vmem>>, vector<1x1x32x32xbf16>
    %49 = vector.shape_cast %48 : vector<1x1x32x32xbf16> to vector<32x32xbf16>
    %cst_21 = arith.constant dense<0.000000e+00> : vector<8x32xf32>
    %50 = tpu.matmul %37, %49, %cst_21 {dimension_numbers = #tpu.dot_dimension_numbers<[1], [0], [0], [1], [0, 0, 1, 1], [], []>} : vector<8x32xbf16>, vector<32x32xbf16>, vector<8x32xf32> -> vector<8x32xf32>
    %51 = vector.broadcast %10 : vector<1x32xf32> to vector<8x32xf32>
    %52 = arith.addf %50, %51 : vector<8x32xf32>
    %53 = vector.extract_strided_slice %42 {offsets = [0, 0], sizes = [8, 8], strides = [1, 1]} : vector<8x32xf32> to vector<8x8xf32>
    %54 = vector.shape_cast %53 : vector<8x8xf32> to vector<1x8x8xf32>
    %55 = vector.extract_strided_slice %42 {offsets = [0, 8], sizes = [8, 8], strides = [1, 1]} : vector<8x32xf32> to vector<8x8xf32>
    %56 = vector.shape_cast %55 : vector<8x8xf32> to vector<1x8x8xf32>
    %57 = vector.extract_strided_slice %42 {offsets = [0, 16], sizes = [8, 8], strides = [1, 1]} : vector<8x32xf32> to vector<8x8xf32>
    %58 = vector.shape_cast %57 : vector<8x8xf32> to vector<1x8x8xf32>
    %59 = vector.extract_strided_slice %42 {offsets = [0, 24], sizes = [8, 8], strides = [1, 1]} : vector<8x32xf32> to vector<8x8xf32>
    %60 = vector.shape_cast %59 : vector<8x8xf32> to vector<1x8x8xf32>
    %61 = tpu.concatenate %54, %56, %58, %60 in 0 : vector<1x8x8xf32>, vector<1x8x8xf32>, vector<1x8x8xf32>, vector<1x8x8xf32> -> vector<4x8x8xf32>
    %62 = arith.truncf %61 : vector<4x8x8xf32> to vector<4x8x8xbf16>
    %63 = vector.extract_strided_slice %47 {offsets = [0, 0], sizes = [8, 8], strides = [1, 1]} : vector<8x32xf32> to vector<8x8xf32>
    %64 = vector.shape_cast %63 : vector<8x8xf32> to vector<1x8x8xf32>
    %65 = vector.extract_strided_slice %47 {offsets = [0, 8], sizes = [8, 8], strides = [1, 1]} : vector<8x32xf32> to vector<8x8xf32>
    %66 = vector.shape_cast %65 : vector<8x8xf32> to vector<1x8x8xf32>
    %67 = vector.extract_strided_slice %47 {offsets = [0, 16], sizes = [8, 8], strides = [1, 1]} : vector<8x32xf32> to vector<8x8xf32>
    %68 = vector.shape_cast %67 : vector<8x8xf32> to vector<1x8x8xf32>
    %69 = vector.extract_strided_slice %47 {offsets = [0, 24], sizes = [8, 8], strides = [1, 1]} : vector<8x32xf32> to vector<8x8xf32>
    %70 = vector.shape_cast %69 : vector<8x8xf32> to vector<1x8x8xf32>
    %71 = tpu.concatenate %64, %66, %68, %70 in 0 : vector<1x8x8xf32>, vector<1x8x8xf32>, vector<1x8x8xf32>, vector<1x8x8xf32> -> vector<4x8x8xf32>
    %72 = arith.truncf %71 : vector<4x8x8xf32> to vector<4x8x8xbf16>
    %73 = vector.extract_strided_slice %52 {offsets = [0, 0], sizes = [8, 8], strides = [1, 1]} : vector<8x32xf32> to vector<8x8xf32>
    %74 = vector.shape_cast %73 : vector<8x8xf32> to vector<1x8x8xf32>
    %75 = vector.extract_strided_slice %52 {offsets = [0, 8], sizes = [8, 8], strides = [1, 1]} : vector<8x32xf32> to vector<8x8xf32>
    %76 = vector.shape_cast %75 : vector<8x8xf32> to vector<1x8x8xf32>
    %77 = vector.extract_strided_slice %52 {offsets = [0, 16], sizes = [8, 8], strides = [1, 1]} : vector<8x32xf32> to vector<8x8xf32>
    %78 = vector.shape_cast %77 : vector<8x8xf32> to vector<1x8x8xf32>
    %79 = vector.extract_strided_slice %52 {offsets = [0, 24], sizes = [8, 8], strides = [1, 1]} : vector<8x32xf32> to vector<8x8xf32>
    %80 = vector.shape_cast %79 : vector<8x8xf32> to vector<1x8x8xf32>
    %81 = tpu.concatenate %74, %76, %78, %80 in 0 : vector<1x8x8xf32>, vector<1x8x8xf32>, vector<1x8x8xf32>, vector<1x8x8xf32> -> vector<4x8x8xf32>
    %82 = arith.truncf %81 : vector<4x8x8xf32> to vector<4x8x8xbf16>
    %83 = tpu.iota {dimensions = array<i32: 0>} : vector<8x8xi32>
    %84 = tpu.iota {dimensions = array<i32: 1>} : vector<8x8xi32>
    %85 = arith.cmpi sgt, %84, %83 : vector<8x8xi32>
    %cst_22 = arith.constant -1.000000e+30 : f32
    %cst_23 = arith.constant 0.000000e+00 : f32
    %86 = vector.broadcast %cst_22 : f32 to vector<8x8xf32>
    %87 = vector.broadcast %cst_23 : f32 to vector<8x8xf32>
    %88 = arith.select %85, %86, %87 : vector<8x8xi1>, vector<8x8xf32>
    %89 = vector.shape_cast %88 : vector<8x8xf32> to vector<1x8x8xf32>
    %c0_24 = arith.constant 0 : index
    %c0_25 = arith.constant 0 : index
    %c0_26 = arith.constant 0 : index
    %90 = vector.load %arg3[%c0_24, %c0_25, %c0_26] : memref<1x1x8xf32, #tpu.memory_space<vmem>>, vector<1x1x8xf32>
    %91 = vector.broadcast %90 : vector<1x1x8xf32> to vector<1x8x8xf32>
    %92 = arith.addf %89, %91 : vector<1x8x8xf32>
    "tpu.trace_start"() <{level = 10 : i32, message = "bqd,bkd->bqk"}> : () -> ()
    %cst_27 = arith.constant dense<0.000000e+00> : vector<4x8x8xf32>
    %93 = tpu.matmul %62, %72, %cst_27 {dimension_numbers = #tpu.dot_dimension_numbers<[2], [2], [1], [1], [0, 0, 0, 1, 1, 1], [0], [0]>} : vector<4x8x8xbf16>, vector<4x8x8xbf16>, vector<4x8x8xf32> -> vector<4x8x8xf32>
    "tpu.trace_stop"() : () -> ()
    %cst_28 = arith.constant 0.353553385 : f32
    %94 = vector.broadcast %cst_28 : f32 to vector<4x8x8xf32>
    %95 = arith.mulf %93, %94 : vector<4x8x8xf32>
    %96 = vector.shape_cast %95 : vector<4x8x8xf32> to vector<4x1x8x8xf32>
    %97 = vector.shape_cast %92 : vector<1x8x8xf32> to vector<1x1x8x8xf32>
    %98 = vector.broadcast %97 : vector<1x1x8x8xf32> to vector<4x1x8x8xf32>
    %99 = arith.addf %96, %98 : vector<4x1x8x8xf32>
    %100 = vector.shape_cast %99 : vector<4x1x8x8xf32> to vector<4x8x8xf32>
    %cst_29 = arith.constant dense<0xFF800000> : vector<4x8xf32>
    %101 = vector.multi_reduction <maximumf>, %100, %cst_29 [2] : vector<4x8x8xf32> to vector<4x8xf32>
    %102 = vector.shape_cast %101 : vector<4x8xf32> to vector<4x8x1xf32>
    %103 = vector.broadcast %102 : vector<4x8x1xf32> to vector<4x8x8xf32>
    %104 = arith.subf %100, %103 : vector<4x8x8xf32>
    %105 = math.exp %104 : vector<4x8x8xf32>
    %cst_30 = arith.constant dense<0.000000e+00> : vector<4x8xf32>
    %106 = vector.multi_reduction <add>, %105, %cst_30 [2] : vector<4x8x8xf32> to vector<4x8xf32>
    %107 = vector.shape_cast %106 : vector<4x8xf32> to vector<4x8x1xf32>
    %108 = tpu.reciprocal %107 : vector<4x8x1xf32> -> vector<4x8x1xf32>
    %109 = vector.broadcast %108 : vector<4x8x1xf32> to vector<4x8x8xf32>
    %110 = arith.mulf %105, %109 : vector<4x8x8xf32>
    %111 = arith.truncf %110 : vector<4x8x8xf32> to vector<4x8x8xbf16>
    "tpu.trace_start"() <{level = 10 : i32, message = "bqk,bkd->bqd"}> : () -> ()
    %cst_31 = arith.constant dense<0.000000e+00> : vector<4x8x8xf32>
    %112 = tpu.matmul %111, %82, %cst_31 {dimension_numbers = #tpu.dot_dimension_numbers<[2], [1], [1], [2], [0, 0, 0, 1, 1, 2], [0], [0]>} : vector<4x8x8xbf16>, vector<4x8x8xbf16>, vector<4x8x8xf32> -> vector<4x8x8xf32>
    "tpu.trace_stop"() : () -> ()
    %113 = vector.extract_strided_slice %112 {offsets = [0, 0, 0], sizes = [1, 8, 8], strides = [1, 1, 1]} : vector<4x8x8xf32> to vector<1x8x8xf32>
    %114 = vector.shape_cast %113 : vector<1x8x8xf32> to vector<8x8xf32>
    %115 = vector.extract_strided_slice %112 {offsets = [1, 0, 0], sizes = [1, 8, 8], strides = [1, 1, 1]} : vector<4x8x8xf32> to vector<1x8x8xf32>
    %116 = vector.shape_cast %115 : vector<1x8x8xf32> to vector<8x8xf32>
    %117 = vector.extract_strided_slice %112 {offsets = [2, 0, 0], sizes = [1, 8, 8], strides = [1, 1, 1]} : vector<4x8x8xf32> to vector<1x8x8xf32>
    %118 = vector.shape_cast %117 : vector<1x8x8xf32> to vector<8x8xf32>
    %119 = vector.extract_strided_slice %112 {offsets = [3, 0, 0], sizes = [1, 8, 8], strides = [1, 1, 1]} : vector<4x8x8xf32> to vector<1x8x8xf32>
    %120 = vector.shape_cast %119 : vector<1x8x8xf32> to vector<8x8xf32>
    %121 = tpu.concatenate %114, %116, %118, %120 in 1 : vector<8x8xf32>, vector<8x8xf32>, vector<8x8xf32>, vector<8x8xf32> -> vector<8x32xf32>
    %122 = arith.truncf %121 : vector<8x32xf32> to vector<8x32xbf16>
    %c0_32 = arith.constant 0 : index
    %c3 = arith.constant 3 : index
    %c0_33 = arith.constant 0 : index
    %c0_34 = arith.constant 0 : index
    %123 = vector.load %arg4[%c0_32, %c3, %c0_33, %c0_34] : memref<1x4x32x32xbf16, #tpu.memory_space<vmem>>, vector<1x1x32x32xbf16>
    %124 = vector.shape_cast %123 : vector<1x1x32x32xbf16> to vector<32x32xbf16>
    %cst_35 = arith.constant dense<0.000000e+00> : vector<8x32xf32>
    %125 = tpu.matmul %122, %124, %cst_35 {dimension_numbers = #tpu.dot_dimension_numbers<[1], [0], [0], [1], [0, 0, 1, 1], [], []>} : vector<8x32xbf16>, vector<32x32xbf16>, vector<8x32xf32> -> vector<8x32xf32>
    %126 = vector.broadcast %11 : vector<1x32xf32> to vector<8x32xf32>
    %127 = arith.addf %125, %126 : vector<8x32xf32>
    %128 = arith.addf %3, %127 : vector<8x32xf32>
    %cst_36 = arith.constant dense<0.000000e+00> : vector<8xf32>
    %129 = vector.multi_reduction <add>, %128, %cst_36 [1] : vector<8x32xf32> to vector<8xf32>
    %130 = vector.shape_cast %129 : vector<8xf32> to vector<8x1xf32>
    %cst_37 = arith.constant 3.200000e+01 : f32
    %131 = vector.broadcast %cst_37 : f32 to vector<8x1xf32>
    %132 = arith.divf %130, %131 : vector<8x1xf32>
    %133 = vector.broadcast %132 : vector<8x1xf32> to vector<8x32xf32>
    %134 = arith.subf %128, %133 : vector<8x32xf32>
    %135 = arith.mulf %134, %134 : vector<8x32xf32>
    %cst_38 = arith.constant dense<0.000000e+00> : vector<8xf32>
    %136 = vector.multi_reduction <add>, %135, %cst_38 [1] : vector<8x32xf32> to vector<8xf32>
    %137 = vector.shape_cast %136 : vector<8xf32> to vector<8x1xf32>
    %cst_39 = arith.constant 3.200000e+01 : f32
    %138 = vector.broadcast %cst_39 : f32 to vector<8x1xf32>
    %139 = arith.divf %137, %138 : vector<8x1xf32>
    %140 = vector.broadcast %132 : vector<8x1xf32> to vector<8x32xf32>
    %141 = arith.subf %128, %140 : vector<8x32xf32>
    %cst_40 = arith.constant 9.99999974E-6 : f32
    %142 = vector.broadcast %cst_40 : f32 to vector<8x1xf32>
    %143 = arith.addf %139, %142 : vector<8x1xf32>
    %144 = math.rsqrt %143 : vector<8x1xf32>
    %145 = vector.broadcast %144 : vector<8x1xf32> to vector<8x32xf32>
    %146 = arith.mulf %141, %145 : vector<8x32xf32>
    %147 = vector.broadcast %12 : vector<1x32xf32> to vector<8x32xf32>
    %148 = arith.mulf %146, %147 : vector<8x32xf32>
    %149 = vector.broadcast %13 : vector<1x32xf32> to vector<8x32xf32>
    %150 = arith.addf %148, %149 : vector<8x32xf32>
    %151 = arith.truncf %150 : vector<8x32xf32> to vector<8x32xbf16>
    %c0_41 = arith.constant 0 : index
    %c0_42 = arith.constant 0 : index
    %c0_43 = arith.constant 0 : index
    %152 = vector.load %arg5[%c0_41, %c0_42, %c0_43] : memref<1x32x64xbf16, #tpu.memory_space<vmem>>, vector<1x32x64xbf16>
    %153 = vector.shape_cast %152 : vector<1x32x64xbf16> to vector<32x64xbf16>
    %cst_44 = arith.constant dense<0.000000e+00> : vector<8x64xf32>
    %154 = tpu.matmul %151, %153, %cst_44 {dimension_numbers = #tpu.dot_dimension_numbers<[1], [0], [0], [1], [0, 0, 1, 1], [], []>} : vector<8x32xbf16>, vector<32x64xbf16>, vector<8x64xf32> -> vector<8x64xf32>
    %c0_45 = arith.constant 0 : index
    %c0_46 = arith.constant 0 : index
    %c0_47 = arith.constant 0 : index
    %155 = vector.load %arg8[%c0_45, %c0_46, %c0_47] : memref<1x1x64xf32, #tpu.memory_space<vmem>>, vector<1x1x64xf32>
    %156 = vector.shape_cast %155 : vector<1x1x64xf32> to vector<1x64xf32>
    %157 = vector.broadcast %156 : vector<1x64xf32> to vector<8x64xf32>
    %158 = arith.addf %154, %157 : vector<8x64xf32>
    %cst_48 = arith.constant 5.000000e-01 : f32
    %159 = vector.broadcast %cst_48 : f32 to vector<8x64xf32>
    %160 = arith.mulf %159, %158 : vector<8x64xf32>
    %cst_49 = arith.constant 4.471500e-02 : f32
    %161 = vector.broadcast %cst_49 : f32 to vector<8x64xf32>
    %162 = arith.mulf %161, %158 : vector<8x64xf32>
    %163 = arith.mulf %162, %158 : vector<8x64xf32>
    %164 = arith.mulf %163, %158 : vector<8x64xf32>
    %165 = arith.addf %158, %164 : vector<8x64xf32>
    %cst_50 = arith.constant 0.797884583 : f32
    %166 = vector.broadcast %cst_50 : f32 to vector<8x64xf32>
    %167 = arith.mulf %166, %165 : vector<8x64xf32>
    %168 = math.tanh %167 : vector<8x64xf32>
    %cst_51 = arith.constant 1.000000e+00 : f32
    %169 = vector.broadcast %cst_51 : f32 to vector<8x64xf32>
    %170 = arith.addf %169, %168 : vector<8x64xf32>
    %171 = arith.mulf %160, %170 : vector<8x64xf32>
    %172 = arith.truncf %171 : vector<8x64xf32> to vector<8x64xbf16>
    %c0_52 = arith.constant 0 : index
    %c0_53 = arith.constant 0 : index
    %c0_54 = arith.constant 0 : index
    %173 = vector.load %arg6[%c0_52, %c0_53, %c0_54] : memref<1x64x32xbf16, #tpu.memory_space<vmem>>, vector<1x64x32xbf16>
    %174 = vector.shape_cast %173 : vector<1x64x32xbf16> to vector<64x32xbf16>
    %cst_55 = arith.constant dense<0.000000e+00> : vector<8x32xf32>
    %175 = tpu.matmul %172, %174, %cst_55 {dimension_numbers = #tpu.dot_dimension_numbers<[1], [0], [0], [1], [0, 0, 1, 1], [], []>} : vector<8x64xbf16>, vector<64x32xbf16>, vector<8x32xf32> -> vector<8x32xf32>
    %176 = vector.broadcast %14 : vector<1x32xf32> to vector<8x32xf32>
    %177 = arith.addf %175, %176 : vector<8x32xf32>
    %178 = arith.addf %128, %177 : vector<8x32xf32>
    %c0_56 = arith.constant 0 : index
    %c0_57 = arith.constant 0 : index
    %179 = vector.load %arg12[%c0_56, %c0_57] : memref<8x32xf32, #tpu.memory_space<vmem>>, vector<8x32xf32>
    tpu.vector_store %arg12[%c0_56, %c0_57], %178 {strides = array<i32>} : memref<8x32xf32, #tpu.memory_space<vmem>>, vector<8x32xf32>,
    %c1_i32 = arith.constant 1 : i32
    %180 = arith.cmpi eq, %arg1, %c1_i32 : i32
    %181 = arith.extui %180 : i1 to i32
    %c0_i32_58 = arith.constant 0 : i32
    %182 = arith.cmpi ne, %181, %c0_i32_58 : i32
    scf.if %182 {
      %183 = arith.truncf %178 : vector<8x32xf32> to vector<8x32xbf16>
      %c0_59 = arith.constant 0 : index
      %c0_60 = arith.constant 0 : index
      %184 = vector.load %arg9[%c0_59, %c0_60] : memref<32x128xbf16, #tpu.memory_space<vmem>>, vector<32x128xbf16>
      %cst_61 = arith.constant dense<0.000000e+00> : vector<8x128xf32>
      %185 = tpu.matmul %183, %184, %cst_61 {dimension_numbers = #tpu.dot_dimension_numbers<[1], [0], [0], [1], [0, 0, 1, 1], [], []>} : vector<8x32xbf16>, vector<32x128xbf16>, vector<8x128xf32> -> vector<8x128xf32>
      %c0_62 = arith.constant 0 : index
      %c0_63 = arith.constant 0 : index
      %186 = vector.load %arg10[%c0_62, %c0_63] : memref<1x128xf32, #tpu.memory_space<vmem>>, vector<1x128xf32>
      %187 = vector.broadcast %186 : vector<1x128xf32> to vector<8x128xf32>
      %188 = arith.addf %185, %187 : vector<8x128xf32>
      %cst_64 = arith.constant dense<0xFF800000> : vector<8xf32>
      %189 = vector.multi_reduction <maximumf>, %188, %cst_64 [1] : vector<8x128xf32> to vector<8xf32>
      %190 = vector.shape_cast %189 : vector<8xf32> to vector<8x1xf32>
      %191 = vector.broadcast %190 : vector<8x1xf32> to vector<8x128xf32>
      %192 = arith.subf %188, %191 : vector<8x128xf32>
      %193 = math.exp %192 : vector<8x128xf32>
      %cst_65 = arith.constant dense<0.000000e+00> : vector<8xf32>
      %194 = vector.multi_reduction <add>, %193, %cst_65 [1] : vector<8x128xf32> to vector<8xf32>
      %195 = vector.shape_cast %194 : vector<8xf32> to vector<8x1xf32>
      %196 = math.log %195 : vector<8x1xf32>
      %197 = vector.broadcast %196 : vector<8x1xf32> to vector<8x128xf32>
      %198 = arith.subf %192, %197 : vector<8x128xf32>
      %c0_66 = arith.constant 0 : index
      %c0_67 = arith.constant 0 : index
      %199 = vector.load %arg11[%c0_66, %c0_67] : memref<8x128xf32, #tpu.memory_space<vmem>>, vector<8x128xf32>
      tpu.vector_store %arg11[%c0_66, %c0_67], %198 {strides = array<i32>} : memref<8x128xf32, #tpu.memory_space<vmem>>, vector<8x128xf32>,
    } else {
    }
    return
  }
  func.func @transform_0(%arg0: i32, %arg1: i32) -> (i32, i32) {
    %c0_i32 = arith.constant 0 : i32
    %c0_i32_0 = arith.constant 0 : i32
    return %arg0, %c0_i32 : i32, i32
  }
  func.func @transform_1(%arg0: i32, %arg1: i32) -> (i32, i32, i32) {
    %c0_i32 = arith.constant 0 : i32
    %c0_i32_0 = arith.constant 0 : i32
    %c0_i32_1 = arith.constant 0 : i32
    return %arg0, %c0_i32, %c0_i32_0 : i32, i32, i32
  }
  func.func @transform_2(%arg0: i32, %arg1: i32) -> (i32, i32, i32, i32) {
    %c0_i32 = arith.constant 0 : i32
    %c0_i32_0 = arith.constant 0 : i32
    %c0_i32_1 = arith.constant 0 : i32
    %c0_i32_2 = arith.constant 0 : i32
    return %arg1, %c0_i32, %c0_i32_0, %c0_i32_1 : i32, i32, i32, i32
  }
  func.func @transform_3(%arg0: i32, %arg1: i32) -> (i32, i32, i32) {
    %c0_i32 = arith.constant 0 : i32
    %c0_i32_0 = arith.constant 0 : i32
    %c0_i32_1 = arith.constant 0 : i32
    return %arg1, %c0_i32, %c0_i32_0 : i32, i32, i32
  }
  func.func @transform_4(%arg0: i32, %arg1: i32) -> (i32, i32, i32) {
    %c0_i32 = arith.constant 0 : i32
    %c0_i32_0 = arith.constant 0 : i32
    %c0_i32_1 = arith.constant 0 : i32
    return %arg1, %c0_i32, %c0_i32_0 : i32, i32, i32
  }
  func.func @transform_5(%arg0: i32, %arg1: i32) -> (i32, i32, i32) {
    %c0_i32 = arith.constant 0 : i32
    %c0_i32_0 = arith.constant 0 : i32
    %c0_i32_1 = arith.constant 0 : i32
    return %arg1, %c0_i32, %c0_i32_0 : i32, i32, i32
  }
  func.func @transform_6(%arg0: i32, %arg1: i32) -> (i32, i32, i32) {
    %c0_i32 = arith.constant 0 : i32
    %c0_i32_0 = arith.constant 0 : i32
    %c0_i32_1 = arith.constant 0 : i32
    return %arg1, %c0_i32, %c0_i32_0 : i32, i32, i32
  }
  func.func @transform_7(%arg0: i32, %arg1: i32) -> (i32, i32) {
    %c0_i32 = arith.constant 0 : i32
    %c0_i32_0 = arith.constant 0 : i32
    %c0_i32_1 = arith.constant 0 : i32
    return %c0_i32, %c0_i32_0 : i32, i32
  }
  func.func @transform_8(%arg0: i32, %arg1: i32) -> (i32, i32) {
    %c0_i32 = arith.constant 0 : i32
    %c0_i32_0 = arith.constant 0 : i32
    %c0_i32_1 = arith.constant 0 : i32
    return %c0_i32, %c0_i32_0 : i32, i32
  }
  func.func @transform_9(%arg0: i32, %arg1: i32) -> (i32, i32) {
    %c0_i32 = arith.constant 0 : i32
    %c0_i32_0 = arith.constant 0 : i32
    return %arg0, %c0_i32 : i32, i32
  }
}

</mosaic_0001>

<bundles_post_ra>
// kernel: tpu_custom_call.1
= control target key start
LH: loop header
LB: loop body
LE: loop exit
PB: predicated region body
PF: predicated region fallthrough
CT: control target
= control target key end

     0   :  { %s2153_s0 = inlined_call_operand.vmem [shape: f32[16,32], index: 0, kind: input, shape index: {}]   ;;  %s2154_s1 = inlined_call_operand.vmem [shape: f32[2,1,8], index: 1, kind: input, shape index: {}]   ;;  %s2155_s2 = inlined_call_operand.hbm [shape: bf16[2,4,32,32], index: 2, kind: input, shape index: {}]   ;;  %s2156_s3 = inlined_call_operand.vmem [shape: bf16[2,32,64], index: 3, kind: input, shape index: {}]   ;;  %s2157_s4 = inlined_call_operand.vmem [shape: bf16[2,64,32], index: 4, kind: input, shape index: {}]   ;;  %s2158_s5 = inlined_call_operand.vmem [shape: f32[2,9,32], index: 5, kind: input, shape index: {}]   ;;  %s2159_s6 = inlined_call_operand.vmem [shape: f32[2,1,64], index: 6, kind: input, shape index: {}]   ;;  %s2160_s7 = inlined_call_operand.vmem [shape: bf16[32,128], index: 7, kind: input, shape index: {}]   ;;  %s2161_s8 = inlined_call_operand.vmem [shape: f32[1,128], index: 8, kind: input, shape index: {}]   ;;  %s2162_s9 = inlined_call_operand.hbm [shape: f32[16,128], index: 9, kind: output, shape index: {}]  }
   0x1   :  { %2179 = sst [smem:[#allocation23_spill]] %s2155_s2 }
   0x2   :  { %2180 = sst [smem:[#allocation24_spill]] %s2162_s9 }
   0x3   :  { %14 = vsyncpa [#allocation4], 0 }
   0x4   :  { %16 = vsyncpa [#allocation4 + $0x1], 0 }
   0x5   :  { %17 = vsyncpa [#allocation5], 0 }
   0x6   :  { %19 = vsyncpa [#allocation5 + $0x1], 0  ;;  %s1811_s30 = smov 0   ;;  %s1813_s10 = smov 0  }
   0x7   :  { %s1815_s11 = smov 0   ;;  %s1817_s12 = smov 0  }
   0x8   :  { %s1819_s13 = smov 0   ;;  %s1821_s14 = smov 0  }
   0x9   :  { %s1823_s15 = smov 0   ;;  %s1825_s16 = smov 0  }
   0xa   :  { %s1827_s17 = smov 0   ;;  %s1829_s18 = smov 0  }
   0xb   :  { %s1831_s19 = smov 0  }
   0xc LB: > { %2181 = sst [smem:[#allocation9_spill]] %s1709_s30  ;;  %s1319_s20 = sadd.s32 4294967295, %s1749_s19   ;;  %s1749_s19 = sphi %s1831_s19, %s25_s19   ;;  %s1745_s18 = sphi %s1829_s18, %s2217_s18   ;;  %s1741_s17 = sphi %s1827_s17, %s2216_s17   ;;  %s1737_s16 = sphi %s1825_s16, %s2215_s16   ;;  %s1733_s15 = sphi %s1823_s15, %s2214_s15   ;;  %s1729_s14 = sphi %s1821_s14, %s2213_s14   ;;  %s1725_s13 = sphi %s1819_s13, %s2212_s13   ;;  %s1721_s12 = sphi %s1817_s12, %s2211_s12   ;;  %s1717_s11 = sphi %s1815_s11, %s2210_s11   ;;  %s1713_s10 = sphi %s1813_s10, %s2209_s10   ;;  %s1709_s30 = sphi %s1811_s30, %s2208_s30  }
   0xd   : > { %2182 = sst [smem:[#allocation10_spill]] %s1713_s10  ;;  %s1320_s21 = sadd.s32 4294967294, %s1749_s19  }
   0xe   : > { %2183 = sst [smem:[#allocation11_spill]] %s1717_s11  ;;  %s34_s22 = sadd.s32 1, %s1741_s17 }
   0xf   : > { %2184 = sst [smem:[#allocation12_spill]] %s1725_s13  ;;  %s37_s23 = sadd.s32 1, %s1745_s18 }
  0x10   : > { %2185 = sst [smem:[#allocation13_spill]] %s1729_s14  ;;  %p35_p0 = scmp.ge.s32.totalorder %s34_s22, 2 }
  0x11   : > { %2186 = sst [smem:[#allocation14_spill]] %s1741_s17  ;;  %s96_s24 = sadd.s32 1, %s1729_s14 }
  0x12   : > { %2187 = sst [smem:[#allocation15_spill]] %s1745_s18  ;;  %p103_p1 = scmp.ne.s32.totalorder %s1729_s14, %s1725_s13 }
  0x13   : > { %2188 = sst [smem:[#allocation16_spill]] %s1749_s19  ;;  %p104_p2 = scmp.eq.s32.totalorder %s1749_s19, 0 }
  0x14   : > { %s2219_s22 = smov (%p35_p0, %s34_s22), 0  ;;  %s2221_s23 = smov (!%p35_p0, %s37_s23), %s1745_s18 }
  0x15   : > { %2189 = sst [smem:[#allocation17_spill]] %s2219_s22  ;;  %s93_s25 = ssub.s32 %s1741_s17, %s2219_s22 }
  0x16   : > { %p1877_p3 = por %p104_p2, %p103_p1  ;;  %p39_p4 = scmp.ge.s32.totalorder %s2221_s23, 2 }
  0x17   : > { %p94_p5 = scmp.eq.s32.totalorder %s93_s25, 0  ;;  %p109_p6 = scmp.ne.s32.totalorder %s1725_s13, %s1721_s12 }
  0x18   : > { %p110_p7 = scmp.eq.s32.totalorder %s1319_s20, 0  ;;  %s2223_s23 = smov (%p39_p4, %s2221_s23), 0 }
  0x19   : > { %2191 = sst [smem:[#allocation18_spill]] %s2223_s23  ;;  %s265_s29 = ssub.s32 %s1745_s18, %s2223_s23 }
  0x1a   : > { %s1885_s27 = scalar_select %p94_p5, %s1729_s14, %s96_s24  }
  0x1b   : > { %p1887_p8 = por %p110_p7, %p109_p6  ;;  %p266_p9 = scmp.eq.s32.totalorder %s265_s29, 0 }
  0x1c   : > { %2192 = sst [smem:[#allocation19_spill]] %s1885_s27  ;;  %s268_s22 = sadd.s32 1, %s1717_s11 }
  0x1d   : > { %p278_p10 = scmp.ne.s32.totalorder %s1717_s11, %s1713_s10  ;;  %p279_p11 = scmp.eq.s32.totalorder %s1319_s20, 3 }
  0x1e   : > { %s1897_s25 = scalar_select %p266_p9, %s1717_s11, %s268_s22  }
  0x1f   : > { %p1899_p12 = por %p279_p11, %p278_p10  ;;  %p284_p13 = scmp.ne.s32.totalorder %s1713_s10, %s1709_s30 }
  0x20   : > { %2194 = sst [smem:[#allocation20_spill]] %s1897_s25  ;;  %p285_p0 = scmp.eq.s32.totalorder %s1320_s21, 3 }
  0x21   : > { %s2195_s12 = scalar_select %p1899_p12, 1, 0 }
  0x22   : > { %p1465_p1 = scmp.lt.s32.totalorder %s1749_s19, 4  ;;  %s324_s24 = sand.u32 1, %s1729_s14  }
  0x23   : > { %2196 = sst [smem:[#allocation21_spill]] %s2195_s12  ;;  %p1907_p2 = por %p285_p0, %p284_p13 }
  0x24   : > { %s1323_s29 = sshll.u32 %s324_s24, 6  ;;  %s1433_s23 = sshll.u32 %s1741_s17, 6 }
  0x25   : > { %s2197_s27 = scalar_select %p1907_p2, 1, 0 }
  0x26   : > { %s2199_s2 = sld [smem:[#allocation23_spill]]  ;;  %s328_s11 = scalar_lea.vmem [#allocation3], %s1323_s29 }
  0x27   : > { %2198 = sst [smem:[#allocation22_spill]] %s2197_s27  ;;  %s336_s9 = sshll.u32 %s328_s11, 4  ;;  %s337_s9 = int_to_ptr.vmem [resolvable:$true] %s336_s9 }
  0x28   : > { %p1458_p4 = pnand %p1465_p1, %p1877_p3  ;;  %p1326_p5 = scmp.ge.s32.totalorder %s1749_s19, 1 }
  0x29   : > { %p374_p6 = scmp.lt.s32.totalorder %s1749_s19, 5  ;;  %s325_s21 = scalar_lea.sflag [#allocation4], %s324_s24 }
  0x2a   : > { %s1751_s14 = smov 64   ;;  %s1752_s30 = smov 4  }
  0x2b   : > { %p375_p7 = pnand %p1326_p5, %p374_p6 }
  0x2c   : > { %s333_s22 = scalar_lea.hbm %s2199_s2, %s1433_s23  ;;  %s380_s17 = sand.u32 (!%p375_p7), 1, %s1725_s13  }
  0x2d   : > { %s334_s25 = sshll.u32 %s333_s22, 4  ;;  %378 = sbr.rel (%p375_p7) target bundleno = 2364 (0x93c), region = 56  ;;  %s335_s25 = int_to_ptr.hbm [resolvable:$true] %s334_s25 }
  0x2e   : > { %1460 = dma.hbm_to_vmem [thread:$0]  (!%p1458_p4), %s335_s25, 1024, %s337_s9, %s325_s21, %s1751_s14, %s1751_s14, %s1752_s30  }
  0x2f   : > { %s1327_s18 = sshll.u32 (!%p375_p7), %s380_s17, 6  ;;  %s381_s23 = scalar_lea.sflag (!%p375_p7), [#allocation4], %s380_s17 }
  0x30   : > { %s1920_s20 = scalar_lea.vmem (!%p375_p7), [#allocation3], %s1327_s18 }
  0x32   : > { %1700 = dma.done.wait (%p1887_p8), %s381_s23, 1024  }
  0x33   : > { %1702 = vsyncadd (%p1887_p8), %s381_s23, 4294966272  ;;  %s2171_s9 = sand.u32 1, %s1713_s10   ;;  %p445_p3 = scmp.lt.s32.totalorder %s1737_s16, 1 }
  0x34   : > { %s1930_s30 = sshll.u32 %s2171_s9, 3  ;;  %p452_p9 = scmp.lt.s32.totalorder %s1733_s15, 1 }
  0x35   : > { %s1934_s11 = scalar_select %p445_p3, %s1737_s16, 1 }
  0x36   : > { %s1937_s14 = scalar_select %p452_p9, %s1733_s15, 1 }
  0x37   : > { %s1329_s17 = sshll.u32 %s1934_s11, 3  ;;  %s451_s25 = scalar_lea.vmem %s2154_s1, %s1934_s11 }
  0x38   : > { %s448_s22 = scalar_lea.vmem %s2153_s0, %s1329_s17  ;;  %s1434_s21 = sshll.u32 %s1937_s14, 4 }
  0x39   : > { %s1951_s9 = scalar_lea.vmem %s2156_s3, %s1434_s21  ;;  %s1435_s2 = sshll.u32 %s1937_s14, 5 }
  0x3a   : > { %s1957_s19 = scalar_lea.vmem %s2157_s4, %s1435_s2  ;;  %s1962_s26 = scalar_lea.vmem %s2158_s5, %s1434_s21 }
  0x3b   : > { %s469_s17 = scalar_lea.vmem %s2159_s6, %s1937_s14  ;;  %s444_s29 = scalar_lea.vmem [#allocation6], %s1930_s30 }
  0x3c   : > { %p1336_p8 = scmp.ne.s32.totalorder %s1733_s15, 0 }
  0x3e   : > { %474 = sbr.rel (%p1336_p8) target bundleno = 69 (0x45), region = 64 }
  0x43   : > { %v475_v0 = vld [vmem:[%s448_s22] sm:$0xff]  ;;  %vm476_vm0 = vcmask 261120  }
  0x44   : > { %477 = vst.msk [vmem:[#allocation2] sm:$0xff] %vm476_vm0, %v475_v0 }
  0x45 PF: > { %vm481_vm1 = vcmask 261120   ;;  %v1753_v3 = vmov 32.0   ;;  %v1438_v15 = vld [vmem:[%s1920_s20 + $0x8] sm:$0xff]  ;;  %v1440_v16 = vld [vmem:[%s1920_s20 + $0x18] sm:$0xff]  ;;  %v1437_v18 = vld [vmem:[%s1920_s20] sm:$0xff]  ;;  %vm664_vm6 = vcmask 64512  }
  0x46   : > { %1568 = vrcp.f32 %v1753_v3  ;;  %v1442_v17 = vld [vmem:[%s1920_s20 + $0x28] sm:$0xff]  ;;  %542 = vmatpush.bf16.msra.mxu0 %v1438_v15  ;;  %573 = vmatpush.bf16.msra.mxu1 %v1440_v16  ;;  %v1439_v19 = vld [vmem:[%s1920_s20 + $0x10] sm:$0xff]  ;;  %v1441_v20 = vld [vmem:[%s1920_s20 + $0x20] sm:$0xff]  ;;  %s1754_s2 = smov 120   ;;  %s1755_s10 = smov 104   ;;  %vm852_vm7 = vcmask 1043456  }
  0x47   : > { %604 = vmatpush.bf16.msra.mxu2 %v1442_v17  ;;  %v1987_v29 = vld [vmem:[%s1962_s26] sm:$0xff]  ;;  %s1756_s13 = smov 112   ;;  %s1758_s11 = smov 8  }
  0x48   : > { %v511_v31 = vperm.slane %v1987_v29, 0  ;;  %v513_v34 = vperm.slane %v1987_v29, 1  ;;  %v520_v38 = vperm.slane %v1987_v29, 2  ;;  %v554_v39 = vperm.slane %v1987_v29, 3  ;;  %s1760_s22 = smov 24   ;;  %p1419_p10 = scmp.ne.s32.totalorder %s1733_s15, 1 }
  0x49   : > { %v585_v45 = vperm.slane %v1987_v29, 4 }
  0x4a   : > { %543 = vmatpush.bf16.msra.mxu0 %v1437_v18  ;;  %574 = vmatpush.bf16.msra.mxu1 %v1439_v19 }
  0x4b   : > { %v1970_v1 = vld [vmem:[#allocation2] sm:$0xff]  ;;  %605 = vmatpush.bf16.msra.mxu2 %v1441_v20 }
  0x4c   : > { %v482_v2 = vsel %vm481_vm1, %v1970_v1, 0.0  ;;  %v1569_v4 = vpop.eup %1568 }
  0x4d   : > { %483 = vadd.xlane.f32.xlu0 %v482_v2  ;;  %v486_v5 = vmul.f32 32.0, %v1569_v4  ;;  %vm490_vm2 = vweird.f32 %v1569_v4 }
  0x4f   : > { %v487_v6 = vsub.f32 1.0, %v486_v5 }
  0x51   : > { %v488_v7 = vmul.f32 %v1569_v4, %v487_v6 }
  0x53   : > { %v489_v8 = vadd.f32 %v1569_v4, %v488_v7 }
  0x55   : > { %v1974_v9 = vsel %vm490_vm2, %v1569_v4, %v489_v8 }
  0xc0   : > { %v484_v10 = vpop.xlane.xlu0 %483 }
  0xc1   : > { %v492_v11 = vmul.f32 %v1974_v9, %v484_v10  ;;  %v653_v10 = vlaneseq }
  0xc3   : > { %v493_v12 = vsub.f32 %v1970_v1, %v492_v11  ;;  %v654_v11 = vshrl.u32 %v653_v10, 7 }
  0xc5   : > { %v494_v13 = vmul.f32 %v493_v12, %v493_v12 }
  0xc7   : > { %v495_v14 = vsel %vm481_vm1, %v494_v13, 0.0  ;;  %v1565_v13 = vld [vmem:[%s451_s25] ss:$0 sm:$0xff]  ;;  %s1759_s25 = smov 16  }
  0xc8   : > { %496 = vadd.xlane.f32.xlu0 %v495_v14  ;;  %v1757_v14 = vmov 0.0  }
 0x13b   : > { %v497_v21 = vpop.xlane.xlu0 %496 }
 0x13c   : > { %v498_v22 = vmul.f32 %v497_v21, %v1974_v9 }
 0x13e   : > { %v499_v23 = vadd.f32 1e-05, %v498_v22 }
 0x140   : > { %1570 = vrsqrt.f32 %v499_v23  ;;  %vm506_vm4 = vweird.f32 %v499_v23 }
 0x146   : > { %v1571_v24 = vpop.eup %1570 }
 0x147   : > { %v501_v25 = vmul.f32 %v1571_v24, %v499_v23  ;;  %vm507_vm3 = vweird.f32 %v1571_v24 }
 0x148   : > { %vm508_vm5 = vmor %vm506_vm4, %vm507_vm3 }
 0x149   : > { %v502_v26 = vmul.f32 %v1571_v24, %v501_v25 }
 0x14b   : > { %v503_v27 = vmul.f32 0.5, %v502_v26 }
 0x14d   : > { %v504_v28 = vsub.f32 1.5, %v503_v27 }
 0x14f   : > { %v505_v30 = vmul.f32 %v1571_v24, %v504_v28 }
 0x151   : > { %v509_v32 = vsel %vm508_vm5, %v1571_v24, %v505_v30 }
 0x152   : > { %v510_v33 = vmul.f32 %v509_v32, %v493_v12  ;;  %v656_v12 = vand.u32 127, %v653_v10 }
 0x154   : > { %v512_v35 = vmul.f32 %v511_v31, %v510_v33  ;;  %vm657_vm8 = vcmp.gt.s32.totalorder %v656_v12, %v654_v11 }
 0x155   : > { %v658_v15 = vsel %vm657_vm8, -1e+30, %v1757_v14 }
 0x156   : > { %v514_v36 = vadd.f32 %v513_v34, %v512_v35  ;;  %v663_v18 = vadd.f32 %v1565_v13, %v658_v15 }
 0x158   : > { %v515_v37 = vpack.c.bf16 %v514_v36, %v514_v36 }
 0x15a   : > { %1345 = vmatmul.msk.bf16.vlgmr.msra.gmra.mxu0 %vm481_vm1, %v515_v37  ;;  %1358 = vmatmul.msk.bf16.vlgmr.msra.gmra.mxu1 %vm481_vm1, %v515_v37 }
 0x15b   : > { %1371 = vmatmul.msk.bf16.vlgmr.msra.gmra.mxu2 %vm481_vm1, %v515_v37 }
 0x1d7   : > { %v545_v40 = vpop.f32.mrf.mxu0  ;;  %v576_v41 = vpop.f32.mrf.mxu1 }
 0x1d8   : > { %v546_v42 = vadd.f32 %v545_v40, %v520_v38  ;;  %v577_v43 = vadd.f32 %v576_v41, %v554_v39 }
 0x1da   : > { %626 = vrot.lane.b32.xlu2 %v577_v43, %s1754_s2  ;;  %632 = vrot.lane.b32.xlu1 %v577_v43, %s1755_s10  ;;  %v635_v44 = vpack.c.bf16 %v577_v43, %v577_v43  ;;  %v621_v53 = vpack.c.bf16 %v546_v42, %v546_v42 }
 0x1db   : > { %612 = vrot.lane.b32.xlu0 %v546_v42, %s1754_s2 }
 0x1dc   : > { %v669_v46 = vsel %vm664_vm6, %v635_v44, 0 }
 0x1dd   : > { %678 = vmatpush.bf16.xpose.msra.mxu3 %v669_v46 }
 0x1de   : > { %v607_v47 = vpop.f32.mrf.mxu2 }
 0x1df   : > { %v2001_v48 = vadd.f32 %v607_v47, %v585_v45  ;;  %v547_v49 = vpop.f32.mrf.mxu0  ;;  %v578_v50 = vpop.f32.mrf.mxu1 }
 0x1e1   : > { %v649_v51 = vpack.c.bf16 %v2001_v48, %v2001_v48 }
 0x1e2   : > { %629 = vrot.lane.b32.xlu2 %v577_v43, %s1756_s13  ;;  %618 = vrot.lane.b32.xlu1 %v546_v42, %s1755_s10 }
 0x1e3   : > { %v854_v52 = vsel %vm852_vm7, %v649_v51, 0 }
 0x1e4   : > { %1372 = vmatmul.msk.bf16.vlgmr.msra.gmra.mxu3 %vm664_vm6, %v621_v53 }
 0x1e5   : > { %863 = vmatpush.bf16.msrb.mxu3 %v854_v52 }
 0x1e6   : > { %v609_v54 = vpop.f32.mrf.mxu2 }
 0x1ea   : > { %615 = vrot.lane.b32.xlu1 %v546_v42, %s1756_s13 }
 0x234   : > { %v627_v55 = vpop.permute.xlu2 %626 }
 0x235   : > { %v636_v56 = vpack.c.bf16 %v627_v55, %v627_v55 }
 0x237   : > { %v688_v57 = vsel %vm664_vm6, %v636_v56, 0 }
 0x238   : > { %697 = vmatpush.bf16.xpose.msrb.mxu0 %v688_v57 }
 0x23c   : > { %v630_v58 = vpop.permute.xlu2 %629 }
 0x23d   : > { %v637_v59 = vpack.c.bf16 %v630_v58, %v630_v58 }
 0x23f   : > { %v707_v60 = vsel %vm664_vm6, %v637_v59, 0 }
 0x240   : > { %716 = vmatpush.bf16.xpose.msrb.mxu1 %v707_v60 }
 0x24c   : > { %v633_v61 = vpop.permute.xlu1 %632 }
 0x24d   : > { %v638_v62 = vpack.c.bf16 %v633_v61, %v633_v61  ;;  %v613_v63 = vpop.permute.xlu0 %612 }
 0x24e   : > { %v622_v0 = vpack.c.bf16 %v613_v63, %v613_v63 }
 0x24f   : > { %v726_v2 = vsel %vm664_vm6, %v638_v62, 0 }
 0x250   : > { %1373 = vmatmul.msk.bf16.vlgmr.msrb.gmra.mxu0 %vm664_vm6, %v622_v0  ;;  %735 = vmatpush.bf16.xpose.msrb.mxu2 %v726_v2 }
 0x254   : > { %v619_v3 = vpop.permute.xlu1 %618 }
 0x255   : > { %v624_v4 = vpack.c.bf16 %v619_v3, %v619_v3 }
 0x257   : > { %1375 = vmatmul.msk.bf16.vlgmr.msrb.gmra.mxu2 %vm664_vm6, %v624_v4 }
 0x25c   : > { %v616_v5 = vpop.permute.xlu1 %615 }
 0x25d   : > { %v623_v6 = vpack.c.bf16 %v616_v5, %v616_v5 }
 0x25f   : > { %1374 = vmatmul.msk.bf16.vlgmr.msrb.gmra.mxu1 %vm664_vm6, %v623_v6 }
 0x267   : > { %v680_v7 = vpop.f32.mrf.mxu3 }
 0x268   : > { %v741_v27 = vmul.f32 0.35355338, %v680_v7 }
 0x26a   : > { %v745_v33 = vadd.f32 %v741_v27, %v663_v18 }
 0x26c   : > { %v749_v35 = vsel %vm664_vm6, %v745_v33, -inf }
 0x26f   : > { %v682_v8 = vpop.f32.mrf.mxu3 }
 0x2cd   : > { %v699_v16 = vpop.f32.mrf.mxu0 }
 0x2ce   : > { %v742_v17 = vmul.f32 0.35355338, %v699_v16 }
 0x2d0   : > { %v746_v19 = vadd.f32 %v742_v17, %v663_v18 }
 0x2d2   : > { %v752_v20 = vsel %vm664_vm6, %v746_v19, -inf }
 0x2d3   : > { %753 = vmax.xlane.f32.xlu1 %v752_v20 }
 0x2d5   : > { %v701_v21 = vpop.f32.mrf.mxu0 }
 0x2da   : > { %v737_v22 = vpop.f32.mrf.mxu2 }
 0x2db   : > { %v744_v23 = vmul.f32 0.35355338, %v737_v22 }
 0x2dc   : > { %v718_v24 = vpop.f32.mrf.mxu1 }
 0x2dd   : > { %v743_v25 = vmul.f32 0.35355338, %v718_v24  ;;  %v748_v26 = vadd.f32 %v744_v23, %v663_v18 }
 0x2df   : > { %v758_v28 = vsel %vm664_vm6, %v748_v26, -inf  ;;  %v747_v30 = vadd.f32 %v743_v25, %v663_v18 }
 0x2e0   : > { %759 = vmax.xlane.f32.xlu2 %v758_v28 }
 0x2e1   : > { %v755_v31 = vsel %vm664_vm6, %v747_v30, -inf }
 0x2e2   : > { %v739_v32 = vpop.f32.mrf.mxu2  ;;  %756 = vmax.xlane.f32.xlu0 %v755_v31 }
 0x2e4   : > { %v720_v34 = vpop.f32.mrf.mxu1 }
 0x2e8   : > { %750 = vmax.xlane.f32.xlu2 %v749_v35 }
 0x2f6   : > { %640 = vrot.lane.b32.xlu0 %v2001_v48, %s1754_s2 }
 0x346   : > { %v754_v36 = vpop.xlane.xlu1 %753 }
 0x347   : > { %v762_v37 = vsub.f32 %v746_v19, %v754_v36 }
 0x349   : > { %v767_v38 = vmul.f32 1.442695, %v762_v37 }
 0x34b   : > { %1572 = vpow2.f32 %v767_v38 }
 0x351   : > { %v1573_v39 = vpop.eup %1572 }
 0x352   : > { %v776_v40 = vsel %vm664_vm6, %v1573_v39, 0.0 }
 0x353   : > { %777 = vadd.xlane.f32.xlu1 %v776_v40  ;;  %v760_v41 = vpop.xlane.xlu2 %759 }
 0x354   : > { %v764_v44 = vsub.f32 %v748_v26, %v760_v41 }
 0x355   : > { %v757_v42 = vpop.xlane.xlu0 %756 }
 0x356   : > { %v763_v43 = vsub.f32 %v747_v30, %v757_v42  ;;  %v771_v46 = vmul.f32 1.442695, %v764_v44 }
 0x358   : > { %v769_v45 = vmul.f32 1.442695, %v763_v43 }
 0x35a   : > { %1574 = vpow2.f32 %v769_v45 }
 0x35b   : > { %v751_v47 = vpop.xlane.xlu2 %750  ;;  %1576 = vpow2.f32 %v771_v46 }
 0x35c   : > { %v761_v49 = vsub.f32 %v745_v33, %v751_v47 }
 0x35e   : > { %v765_v50 = vmul.f32 1.442695, %v761_v49 }
 0x360   : > { %v2028_v51 = vpop.eup %1574  ;;  %1578 = vpow2.f32 %v765_v50 }
 0x361   : > { %v779_v52 = vsel %vm664_vm6, %v2028_v51, 0.0  ;;  %v2032_v53 = vpop.eup %1576 }
 0x362   : > { %780 = vadd.xlane.f32.xlu2 %v779_v52  ;;  %v782_v58 = vsel %vm664_vm6, %v2032_v53, 0.0 }
 0x366   : > { %v2034_v54 = vpop.eup %1578 }
 0x367   : > { %v773_v55 = vsel %vm664_vm6, %v2034_v54, 0.0 }
 0x368   : > { %v641_v56 = vpop.permute.xlu0 %640  ;;  %774 = vadd.xlane.f32.xlu0 %v773_v55 }
 0x369   : > { %v650_v57 = vpack.c.bf16 %v641_v56, %v641_v56 }
 0x36a   : > { %783 = vadd.xlane.f32.xlu2 %v782_v58 }
 0x36b   : > { %v873_v59 = vsel %vm852_vm7, %v650_v57, 0 }
 0x36c   : > { %646 = vrot.lane.b32.xlu1 %v2001_v48, %s1755_s10  ;;  %882 = vmatpush.bf16.msra.mxu0 %v873_v59 }
 0x382   : > { %643 = vrot.lane.b32.xlu2 %v2001_v48, %s1756_s13 }
 0x3c6   : > { %v778_v60 = vpop.xlane.xlu1 %777 }
 0x3c7   : > { %1580 = vrcp.f32 %v778_v60  ;;  %v810_v0 = vand.u32 2147483648, %v778_v60  ;;  %v808_v3 = vand.u32 2147483647, %v778_v60  ;;  %vm804_vm10 = vweird.f32 %v778_v60 }
 0x3c9   : > { %v811_v5 = vor.u32 1.1754944e-38, %v810_v0  ;;  %vm809_vm12 = vcmp.eq.f32.partialorder %v808_v3, 8.507059e+37  ;;  %v1443_v3 = vld [vmem:[%s1920_s20 + $0x30] sm:$0xff] }
 0x3cd   : > { %v1581_v61 = vpop.eup %1580 }
 0x3ce   : > { %v800_v62 = vmul.f32 %v1581_v61, %v778_v60  ;;  %vm805_vm9 = vweird.f32 %v1581_v61 }
 0x3cf   : > { %vm806_vm11 = vmor %vm804_vm10, %vm805_vm9 }
 0x3d0   : > { %v801_v63 = vsub.f32 1.0, %v800_v62 }
 0x3d2   : > { %v802_v2 = vmul.f32 %v1581_v61, %v801_v63 }
 0x3d4   : > { %v803_v4 = vadd.f32 %v1581_v61, %v802_v2  ;;  %v1444_v2 = vld [vmem:[%s1920_s20 + $0x38] sm:$0xff] }
 0x3d5   : > { %v781_v6 = vpop.xlane.xlu2 %780  ;;  %971 = vmatpush.bf16.msra.mxu3 %v1444_v2 }
 0x3d6   : > { %v807_v7 = vsel %vm806_vm11, %v1581_v61, %v803_v4  ;;  %1582 = vrcp.f32 %v781_v6  ;;  %v824_v18 = vand.u32 2147483648, %v781_v6  ;;  %v822_v20 = vand.u32 2147483647, %v781_v6 }
 0x3d7   : > { %v812_v8 = vsel %vm809_vm12, %v811_v5, %v807_v7  ;;  %vm818_vm14 = vweird.f32 %v781_v6  ;;  %vm941_vm12 = vcmask 195584  }
 0x3d8   : > { %v842_v10 = vmul.f32 %v1573_v39, %v812_v8  ;;  %v825_v26 = vor.u32 1.1754944e-38, %v824_v18  ;;  %vm823_vm0 = vcmp.eq.f32.partialorder %v822_v20, 8.507059e+37 }
 0x3d9   : > { %972 = vmatpush.bf16.msra.mxu3 %v1443_v3 }
 0x3da   : > { %v846_v48 = vpack.c.bf16 %v842_v10, %v842_v10 }
 0x3db   : > { %v775_v11 = vpop.xlane.xlu0 %774 }
 0x3dc   : > { %v1583_v12 = vpop.eup %1582  ;;  %1377 = vmatmul.msk.bf16.vlgmr.msra.gmra.mxu0 %vm664_vm6, %v846_v48  ;;  %1584 = vrcp.f32 %v775_v11  ;;  %v794_v33 = vand.u32 2147483647, %v775_v11  ;;  %v796_v34 = vand.u32 2147483648, %v775_v11  ;;  %vm790_vm3 = vweird.f32 %v775_v11 }
 0x3dd   : > { %v814_v13 = vmul.f32 %v1583_v12, %v781_v6  ;;  %v784_v14 = vpop.xlane.xlu2 %783  ;;  %vm819_vm13 = vweird.f32 %v1583_v12 }
 0x3de   : > { %v647_v15 = vpop.permute.xlu1 %646  ;;  %1586 = vrcp.f32 %v784_v14  ;;  %vm820_vm15 = vmor %vm818_vm14, %vm819_vm13  ;;  %v836_v39 = vand.u32 2147483647, %v784_v14  ;;  %v838_v40 = vand.u32 2147483648, %v784_v14  ;;  %v797_v45 = vor.u32 1.1754944e-38, %v796_v34 }
 0x3df   : > { %v815_v16 = vsub.f32 1.0, %v814_v13  ;;  %v652_v17 = vpack.c.bf16 %v647_v15, %v647_v15  ;;  %vm795_vm8 = vcmp.eq.f32.partialorder %v794_v33, 8.507059e+37  ;;  %vm832_vm9 = vweird.f32 %v784_v14 }
 0x3e0   : > { %v839_v50 = vor.u32 1.1754944e-38, %v838_v40  ;;  %vm837_vm11 = vcmp.eq.f32.partialorder %v836_v39, 8.507059e+37  ;;  %v1001_v33 = vperm.slane %v1987_v29, 6  ;;  %v1450_v39 = vld [vmem:[%s1957_s19 + $0x18] sm:$0xff]  ;;  %v1449_v40 = vld [vmem:[%s1957_s19 + $0x10] sm:$0xff] }
 0x3e1   : > { %v816_v19 = vmul.f32 %v1583_v12, %v815_v16  ;;  %v911_v21 = vsel %vm852_vm7, %v652_v17, 0 }
 0x3e2   : > { %v1585_v22 = vpop.eup %1584  ;;  %920 = vmatpush.bf16.msra.mxu2 %v911_v21 }
 0x3e3   : > { %v817_v23 = vadd.f32 %v1583_v12, %v816_v19  ;;  %v786_v24 = vmul.f32 %v1585_v22, %v775_v11  ;;  %vm791_vm2 = vweird.f32 %v1585_v22  ;;  %v949_v11 = vperm.slane %v1987_v29, 5 }
 0x3e4   : > { %v1587_v25 = vpop.eup %1586  ;;  %vm792_vm5 = vmor %vm790_vm3, %vm791_vm2 }
 0x3e5   : > { %v821_v27 = vsel %vm820_vm15, %v1583_v12, %v817_v23  ;;  %v787_v28 = vsub.f32 1.0, %v786_v24  ;;  %v828_v30 = vmul.f32 %v1587_v25, %v784_v14  ;;  %v644_v31 = vpop.permute.xlu2 %643  ;;  %vm833_vm4 = vweird.f32 %v1587_v25  ;;  %v1445_v23 = vld [vmem:[%s1951_s9] sm:$0xff] }
 0x3e6   : > { %v826_v32 = vsel %vm823_vm0, %v825_v26, %v821_v27  ;;  %v651_v35 = vpack.c.bf16 %v644_v31, %v644_v31  ;;  %vm834_vm10 = vmor %vm832_vm9, %vm833_vm4  ;;  %vm1085_vm15 = vcmask 523264  }
 0x3e7   : > { %v843_v36 = vmul.f32 %v2028_v51, %v826_v32  ;;  %v788_v37 = vmul.f32 %v1585_v22, %v787_v28  ;;  %v829_v38 = vsub.f32 1.0, %v828_v30 }
 0x3e8   : > { %v892_v41 = vsel %vm852_vm7, %v651_v35, 0  ;;  %vm939_vm7 = vcmask 130048   ;;  %v1003_v35 = vperm.slane %v1987_v29, 7 }
 0x3e9   : > { %v789_v42 = vadd.f32 %v1585_v22, %v788_v37  ;;  %v830_v43 = vmul.f32 %v1587_v25, %v829_v38  ;;  %901 = vmatpush.bf16.msra.mxu1 %v892_v41  ;;  %v847_v44 = vpack.c.bf16 %v843_v36, %v843_v36  ;;  %v1448_v41 = vld [vmem:[%s1957_s19 + $0x8] sm:$0xff] }
 0x3eb   : > { %v793_v46 = vsel %vm792_vm5, %v1585_v22, %v789_v42  ;;  %v831_v47 = vadd.f32 %v1587_v25, %v830_v43  ;;  %v1446_v22 = vld [vmem:[%s1951_s9 + $0x8] sm:$0xff]  ;;  %v1447_v42 = vld [vmem:[%s1957_s19] sm:$0xff] }
 0x3ec   : > { %v798_v49 = vsel %vm795_vm8, %v797_v45, %v793_v46  ;;  %1378 = vmatmul.msk.bf16.vlgmr.msra.gmra.mxu1 %vm664_vm6, %v847_v44  ;;  %1035 = vmatpush.bf16.msrb.mxu0 %v1446_v22  ;;  %v1566_v43 = vld [vmem:[%s469_s17] ss:$0 sm:$0xff] }
 0x3ed   : > { %v835_v51 = vsel %vm834_vm10, %v1587_v25, %v831_v47  ;;  %v841_v52 = vmul.f32 %v2034_v54, %v798_v49  ;;  %1093 = vmatpush.bf16.msrb.mxu1 %v1450_v39 }
 0x3ee   : > { %v840_v55 = vsel %vm837_vm11, %v839_v50, %v835_v51 }
 0x3ef   : > { %v844_v56 = vmul.f32 %v2032_v53, %v840_v55  ;;  %v845_v57 = vpack.c.bf16 %v841_v52, %v841_v52 }
 0x3f0   : > { %1036 = vmatpush.bf16.msrb.mxu0 %v1445_v23 }
 0x3f1   : > { %1376 = vmatmul.msk.bf16.vlgmr.msrb.gmra.mxu3 %vm664_vm6, %v845_v57  ;;  %v848_v58 = vpack.c.bf16 %v844_v56, %v844_v56  ;;  %1094 = vmatpush.bf16.msrb.mxu1 %v1449_v40 }
 0x3f3   : > { %1379 = vmatmul.msk.bf16.vlgmr.msra.gmra.mxu2 %vm664_vm6, %v848_v58 }
 0x3f5   : > { %1095 = vmatpush.bf16.msrb.mxu1 %v1448_v41 }
 0x3f9   : > { %1096 = vmatpush.bf16.msrb.mxu1 %v1447_v42 }
 0x459   : > { %v884_v59 = vpop.f32.mrf.mxu0 }
 0x45a   : > { %927 = vrot.lane.b32.xlu1 %v884_v59, %s1758_s11  ;;  %v1567_v59 = vld [vmem:[%s1962_s26 + $0x8] ss:$0 sm:$0xff] }
 0x461   : > { %v886_v60 = vpop.f32.mrf.mxu0 }
 0x469   : > { %v903_v61 = vpop.f32.mrf.mxu1 }
 0x46a   : > { %931 = vrot.lane.b32.xlu2 %v903_v61, %s1759_s25 }
 0x471   : > { %v905_v62 = vpop.f32.mrf.mxu1 }
 0x474   : > { %v865_v54 = vpop.f32.mrf.mxu3 }
 0x476   : > { %v922_v63 = vpop.f32.mrf.mxu2 }
 0x477   : > { %935 = vrot.lane.b32.xlu1 %v922_v63, %s1760_s22 }
 0x47c   : > { %v867_v53 = vpop.f32.mrf.mxu3 }
 0x47e   : > { %v924_v0 = vpop.f32.mrf.mxu2 }
 0x4c4   : > { %v932_v6 = vpop.permute.xlu2 %931 }
 0x4cc   : > { %v928_v4 = vpop.permute.xlu1 %927 }
 0x4cd   : > { %v938_v5 = vsel %vm664_vm6, %v865_v54, %v928_v4 }
 0x4ce   : > { %v940_v8 = vsel %vm939_vm7, %v938_v5, %v932_v6 }
 0x4e9   : > { %v936_v7 = vpop.permute.xlu1 %935 }
 0x4ea   : > { %v942_v10 = vsel %vm941_vm12, %v940_v8, %v936_v7 }
 0x4eb   : > { %v943_v48 = vpack.c.bf16 %v942_v10, %v942_v10 }
 0x4ed   : > { %1392 = vmatmul.msk.bf16.vlgmr.msra.gmra.mxu3 %vm481_vm1, %v943_v48 }
 0x570   : > { %v974_v12 = vpop.f32.mrf.mxu3 }
 0x571   : > { %v975_v13 = vadd.f32 %v974_v12, %v949_v11 }
 0x573   : > { %v2060_v14 = vadd.f32 %v975_v13, %v1970_v1 }
 0x575   : > { %v979_v15 = vsel %vm481_vm1, %v2060_v14, 0.0 }
 0x576   : > { %980 = vadd.xlane.f32.xlu2 %v979_v15 }
 0x578   : > { %v976_v16 = vpop.f32.mrf.mxu3 }
 0x5e9   : > { %v981_v17 = vpop.xlane.xlu2 %980 }
 0x5ea   : > { %v982_v18 = vmul.f32 %v981_v17, %v1974_v9 }
 0x5ec   : > { %v983_v19 = vsub.f32 %v2060_v14, %v982_v18 }
 0x5ee   : > { %v984_v20 = vmul.f32 %v983_v19, %v983_v19 }
 0x5f0   : > { %v985_v21 = vsel %vm481_vm1, %v984_v20, 0.0 }
 0x5f1   : > { %986 = vadd.xlane.f32.xlu1 %v985_v21 }
 0x664   : > { %v987_v1 = vpop.xlane.xlu1 %986 }
 0x665   : > { %v988_v24 = vmul.f32 %v987_v1, %v1974_v9 }
 0x667   : > { %v989_v25 = vadd.f32 1e-05, %v988_v24 }
 0x669   : > { %1588 = vrsqrt.f32 %v989_v25  ;;  %vm996_vm13 = vweird.f32 %v989_v25 }
 0x66f   : > { %v1589_v26 = vpop.eup %1588 }
 0x670   : > { %v991_v27 = vmul.f32 %v1589_v26, %v989_v25  ;;  %vm997_vm6 = vweird.f32 %v1589_v26 }
 0x671   : > { %vm998_vm14 = vmor %vm996_vm13, %vm997_vm6 }
 0x672   : > { %v992_v28 = vmul.f32 %v1589_v26, %v991_v27 }
 0x674   : > { %v993_v30 = vmul.f32 0.5, %v992_v28 }
 0x676   : > { %v994_v31 = vsub.f32 1.5, %v993_v30 }
 0x678   : > { %v995_v32 = vmul.f32 %v1589_v26, %v994_v31 }
 0x67a   : > { %v999_v34 = vsel %vm998_vm14, %v1589_v26, %v995_v32 }
 0x67b   : > { %v1000_v9 = vmul.f32 %v999_v34, %v983_v19 }
 0x67d   : > { %v1002_v36 = vmul.f32 %v1001_v33, %v1000_v9 }
 0x67f   : > { %v1004_v37 = vadd.f32 %v1003_v35, %v1002_v36 }
 0x681   : > { %v1005_v38 = vpack.c.bf16 %v1004_v37, %v1004_v37 }
 0x683   : > { %1401 = vmatmul.msk.bf16.vlgmr.msrb.gmra.mxu0 %vm481_vm1, %v1005_v38 }
 0x700   : > { %v1038_v44 = vpop.f32.mrf.mxu0 }
 0x701   : > { %v1039_v29 = vadd.f32 %v1566_v43, %v1038_v44 }
 0x703   : > { %v1043_v45 = vmul.f32 0.044715, %v1039_v29  ;;  %v1042_v55 = vmul.f32 0.5, %v1039_v29 }
 0x705   : > { %v1044_v46 = vmul.f32 %v1043_v45, %v1039_v29 }
 0x707   : > { %v1045_v47 = vmul.f32 %v1044_v46, %v1039_v29 }
 0x708   : > { %v1040_v49 = vpop.f32.mrf.mxu0 }
 0x709   : > { %v1046_v50 = vadd.f32 %v1045_v47, %v1039_v29 }
 0x70b   : > { %v1047_v51 = vmul.f32 0.7978846, %v1046_v50 }
 0x70d   : > { %1590 = vtanh.f32 %v1047_v51 }
 0x713   : > { %v1591_v52 = vpop.eup %1590 }
 0x714   : > { %v1049_v56 = vadd.f32 1.0, %v1591_v52 }
 0x716   : > { %v1050_v57 = vmul.f32 %v1049_v56, %v1042_v55 }
 0x718   : > { %v1051_v58 = vpack.c.bf16 %v1050_v57, %v1050_v57 }
 0x71a   : > { %1418 = vmatmul.msk.bf16.vlgmr.msrb.gmra.mxu1 %vm1085_vm15, %v1051_v58 }
 0x797   : > { %v1098_v60 = vpop.f32.mrf.mxu1 }
 0x798   : > { %v1099_v61 = vadd.f32 %v1567_v59, %v1098_v60 }
 0x79a   : > { %v1102_v62 = vadd.f32 %v1099_v61, %v2060_v14 }
 0x79b   : > { %1107 = sbr.rel (%p1419_p10) target bundleno = 2343 (0x927), region = 68 }
 0x79c   : > { %1103 = vst.msk [vmem:[#allocation2] sm:$0xff] %vm481_vm1, %v1102_v62 }
 0x79f   : > { %v1100_v54 = vpop.f32.mrf.mxu1 }
 0x7a0   : > { %v1452_v63 = vld [vmem:[%s2160_s7 + $0x8] sm:$0xff]  ;;  %v1451_v53 = vld [vmem:[%s2160_s7] sm:$0xff]  ;;  %v1108_v0 = vpack.c.bf16 %v1102_v62, %v1102_v62 }
 0x7a1   : > { %1138 = vmatpush.bf16.msra.mxu0 %v1452_v63  ;;  %v1592_v2 = vld [vmem:[%s2161_s8] ss:$0 sm:$0xff] }
 0x7a5   : > { %1139 = vmatpush.bf16.msra.mxu0 %v1451_v53 }
 0x7a8   : > { %1428 = vmatmul.msk.bf16.vlgmr.msra.gmra.mxu0 %vm481_vm1, %v1108_v0 }
 0x825   : > { %v1141_v3 = vpop.f32.mrf.mxu0 }
 0x826   : > { %v1142_v4 = vadd.f32 %v1592_v2, %v1141_v3 }
 0x828   : > { %1145 = vmax.xlane.f32.xlu0 %v1142_v4 }
 0x82d   : > { %v1143_v5 = vpop.f32.mrf.mxu0 }
 0x89b   : > { %v1146_v6 = vpop.xlane.xlu0 %1145 }
 0x89c   : > { %v1147_v7 = vsub.f32 %v1142_v4, %v1146_v6 }
 0x89e   : > { %v1148_v8 = vmul.f32 1.442695, %v1147_v7 }
 0x8a0   : > { %1593 = vpow2.f32 %v1148_v8 }
 0x8a6   : > { %v1594_v10 = vpop.eup %1593 }
 0x8a7   : > { %1150 = vadd.xlane.f32.xlu0 %v1594_v10 }
 0x91a   : > { %v1151_v48 = vpop.xlane.xlu0 %1150 }
 0x91b   : > { %1595 = vlog2.f32 %v1151_v48 }
 0x921   : > { %v1596_v11 = vpop.eup %1595 }
 0x922   : > { %v1153_v12 = vmul.f32 0.6931472, %v1596_v11 }
 0x924   : > { %v1154_v13 = vsub.f32 %v1147_v7, %v1153_v12 }
 0x926   : > { %1155 = vst [vmem:[%s444_s29] sm:$0xff] %v1154_v13 }
 0x927 PF: > { %s2200_s15 = sld [smem:[#allocation10_spill]]  ;;  %s1430_s24 = sshll.u32 %s1737_s16, 3 }
 0x928   : > { %s2202_s10 = sld [smem:[#allocation24_spill]]  ;;  %s1169_s12 = sshll.u32 %s444_s29, 4  ;;  %s1170_s12 = int_to_ptr.vmem [resolvable:$true] %s1169_s12 }
 0x92d   : > { %s2204_s25 = sand.u32 1, %s2200_s15  }
 0x92e   : > { %s2203_s27 = smov %s2202_s10  ;;  %s1167_s13 = scalar_lea.hbm %s2202_s10, %s1430_s24 }
 0x92f   : > { %s1171_s11 = sshll.u32 %s1167_s13, 4  ;;  %s1157_s22 = scalar_lea.sflag [#allocation5], %s2204_s25  ;;  %s1172_s11 = int_to_ptr.hbm [resolvable:$true] %s1171_s11 }
 0x930   : > { %s1641_s20 = sshra.s32 %s1172_s11, 4  ;;  %s1647_s14 = scalar_lea.hbm %s2203_s27, 16  ;;  %s1642_s20 = int_to_ptr.hbm [resolvable:$true] %s1641_s20 }
 0x931   : > { %s1643_s9 = scalar_lea.hbm %s1642_s20, 8  ;;  %p1648_p1 = scmp.lt.s32.totalorder %s1642_s20, %s2203_s27 }
 0x932   : > { %p1644_p11 = scmp.ne.s32.totalorder %s1642_s20, %s1643_s9  ;;  %p1649_p4 = scmp.lt.s32.totalorder %s1647_s14, %s1643_s9 }
 0x934   : > { %p1645_p13 = pnand %p1644_p11, %p1899_p12  ;;  %p1650_p5 = por %p1649_p4, %p1648_p1 }
 0x936   : > { %p1646_p0 = pneg %p1645_p13 }
 0x938   : > { %p1651_p6 = pnand %p1650_p5, %p1646_p0 }
 0x93a   : > { %1654 = shalt.err (!%p1651_p6)
}
 0x93b   : > { %1455 = dma.vmem_to_hbm [thread:$0]  (%p1899_p12), %s1170_s12, 128, %s1172_s11, %s1157_s22  }
 0x93c PF: > { %s2205_s30 = sld [smem:[#allocation16_spill]] }
 0x93d   : > { %s2206_s29 = sld [smem:[#allocation9_spill]] }
 0x942   : > { %p1466_p7 = scmp.ge.s32.totalorder %s2205_s30, 2 }
 0x943   : > { %s1183_s26 = sand.u32 1, %s2206_s29  }
 0x944   : > { %p1462_p3 = pnand %p1466_p7, %p1907_p2  ;;  %s1184_s15 = scalar_lea.sflag [#allocation5], %s1183_s26 }
 0x946   : > { %p1463_p9 = pneg %p1462_p3 }
 0x948   : > { %1704 = dma.done.wait (%p1463_p9), %s1184_s15, 128  }
 0x949   : > { %1706 = vsyncadd (%p1463_p9), %s1184_s15, 4294967168  ;;  %s25_s19 = sadd.s32 1, %s2205_s30   ;;  %s2208_s30 = sld [smem:[#allocation10_spill]] }
 0x94a   : > { %p22_p8 = scmp.ge.s32.totalorder %s25_s19, 6   ;;  %s2209_s10 = sld [smem:[#allocation11_spill]] }
 0x94b   : > { %s2210_s11 = sld [smem:[#allocation20_spill]] }
 0x94c   : > { %s2211_s12 = sld [smem:[#allocation12_spill]] }
 0x94d   : > { %s2212_s13 = sld [smem:[#allocation13_spill]] }
 0x94e   : > { %s2213_s14 = sld [smem:[#allocation19_spill]]  ;;  %24 = sbr.rel (!%p22_p8) target bundleno = 12 (0xc), region = 130 }
 0x94f   : > { %s2214_s15 = sld [smem:[#allocation14_spill]] }
 0x950   : > { %s2215_s16 = sld [smem:[#allocation15_spill]] }
 0x951   : > { %s2216_s17 = sld [smem:[#allocation17_spill]] }
 0x952   : > { %s2217_s18 = sld [smem:[#allocation18_spill]] }
 0x953   :  { %1190 = vsyncpa [#allocation4], 1 }
 0x954   :  { %1192 = vsyncpa [#allocation4 + $0x1], 1 }
 0x955   :  { %1193 = vsyncpa [#allocation5], 1 }
 0x956   :  { %1195 = vsyncpa [#allocation5 + $0x1], 1 }

</bundles_post_ra>
